<compile_context>
chip_gen: v7x
topology: tpu7x:2x2x1
jax: 0.10.0
libtpu: 0.0.40
codegen_flags: <defaults>
</compile_context>

<pallas_src>
import functools

import jax
import jax.numpy as jnp
from jax.experimental import pallas as pl
from jax.experimental.pallas import tpu as pltpu

BN_EPS = 1e-5
LRELU_SLOPE = 0.2
LANE = 128


def _round_up(x, m):
    return (x + m - 1) // m * m


def _pad2d(a, rows, cols):
    return jnp.pad(a, ((0, rows - a.shape[0]), (0, cols - a.shape[1])))


# ---------------------------------------------------------------------------
# Hardware-derived budgets / capability probes
# ---------------------------------------------------------------------------
@functools.lru_cache(maxsize=None)
def _vmem_budget_bytes():
    """Per-kernel VMEM budget derived from the actual chip (v7x: 64 MiB)."""
    try:
        cap = int(pltpu.get_tpu_info().vmem_capacity_bytes)
    except Exception:
        cap = 64 * 1024 * 1024          # conservative fallback (v7x per-core)
    return min(cap * 3 // 4, 100 * 1024 * 1024)


@functools.lru_cache(maxsize=None)
def _const_pipeline_mode():
    """pl.Buffered(1) for never-changing operands if this jax supports it."""
    try:
        spec = pl.BlockSpec((8, LANE), lambda i: (0, 0),
                            pipeline_mode=pl.Buffered(1))

        def _probe(x_ref, o_ref):
            o_ref[...] = x_ref[...] * 2.0

        f = pl.pallas_call(
            _probe,
            out_shape=jax.ShapeDtypeStruct((8, LANE), jnp.float32),
            grid=(1,),
            in_specs=[spec],
            out_specs=pl.BlockSpec((8, LANE), lambda i: (0, 0)))
        jax.block_until_ready(f(jnp.zeros((8, LANE), jnp.float32)))
        return pl.Buffered(1)
    except Exception:
        return None


def _const_spec(block_shape, index_map):
    """BlockSpec for a constant-index operand; single-buffered when possible."""
    mode = _const_pipeline_mode()
    if mode is None:
        return pl.BlockSpec(block_shape, index_map)
    return pl.BlockSpec(block_shape, index_map, pipeline_mode=mode)


def _make_row_map(tiles_per_core):
    def row_map(c, i):
        return (c * tiles_per_core + i, 0)
    return row_map


# ---------------------------------------------------------------------------
# Pallas kernels
# ---------------------------------------------------------------------------
def _matmul_stats_kernel(p_ref, w_ref, y_ref, part_ref, sum_acc, sq_acc):
    """Row-tiled conv matmul (bf16 in / bf16 out, f32 accum) + BN statistics.

    p_ref:    (tm, Kp)  bf16 im2col rows (zero-padded rows/cols)
    w_ref:    (Kp, OCp) bf16 weights (resident across the grid)
    y_ref:    (tm, OCp) bf16 raw conv output tile
    part_ref: (8, OCp)  f32 per-core partials; row 0 = sum, row 1 = sum of sq.
    """
    i = pl.program_id(1)

    @pl.when(i == 0)
    def _():
        sum_acc[...] = jnp.zeros_like(sum_acc)
        sq_acc[...] = jnp.zeros_like(sq_acc)
        part_ref[...] = jnp.zeros_like(part_ref)

    y = jnp.dot(p_ref[...], w_ref[...], preferred_element_type=jnp.float32)
    y_ref[...] = y.astype(y_ref.dtype)
    # Zero-padded rows contribute 0 to both sums, so dividing by the *real*
    # row count later keeps the statistics exact.
    sum_acc[...] += jnp.sum(y, axis=0, keepdims=True)
    sq_acc[...] += jnp.sum(y * y, axis=0, keepdims=True)

    @pl.when(i == pl.num_programs(1) - 1)
    def _():
        part_ref[0:1, :] = sum_acc[...]
        part_ref[1:2, :] = sq_acc[...]


def _bn_lrelu_apply_kernel(y_ref, ss_ref, o_ref):
    """Fused normalize (folded per-channel scale/shift) + LeakyReLU(0.2)."""
    scale = ss_ref[0:1, :]
    shift = ss_ref[1:2, :]
    z = y_ref[...].astype(jnp.float32) * scale + shift
    o_ref[...] = jnp.where(z >= 0, z, LRELU_SLOPE * z).astype(o_ref.dtype)


def _matmul_sigmoid_kernel(p_ref, w_ref, o_ref):
    y = jnp.dot(p_ref[...], w_ref[...], preferred_element_type=jnp.float32)
    o_ref[...] = jax.nn.sigmoid(y)


# ---------------------------------------------------------------------------
# Pallas wrappers (grid / BlockSpec / tiling)
# ---------------------------------------------------------------------------
def _choose_row_tile(R, Kp, OCp):
    """Largest row tile (<=1024, multiple of 16) whose double-buffered working
    set plus the resident weight fits the per-generation VMEM budget."""
    budget = _vmem_budget_bytes()
    wbuf = 1 if _const_pipeline_mode() is not None else 2
    resident = wbuf * Kp * OCp * 2 + 8 * OCp * 4     # weight + small f32 blocks
    tm = min(1024, _round_up(max(R, 16), 16))
    while tm > 16:
        # bf16 patch tile (x2 buffers) + output tile (f32 upper bound, x2 buffers)
        per_tile = 2 * tm * Kp * 2 + 2 * tm * OCp * 4
        if resident + per_tile <= budget:
            break
        tm = max(16, _round_up(tm // 2, 16))
    return tm


def conv_bn_lrelu(patches, w2d, gamma, beta):
    """patches: (R, Kp) bf16; w2d: (Kp, OCp) bf16; gamma/beta (1, OCp) f32.
    Returns (R, OCp) bf16 BatchNorm(training)+LeakyReLU activations."""
    R = patches.shape[0]
    Kp, OCp = w2d.shape
    tm = _choose_row_tile(R, Kp, OCp)
    n_tiles = pl.cdiv(R, tm)
    nc = 2 if n_tiles >= 2 else 1            # megacore row split (v7x); serial elsewhere
    Rp = _round_up(R, nc * tm)
    tpc = Rp // (nc * tm)
    if patches.shape[0] != Rp:
        patches = jnp.pad(patches, ((0, Rp - R), (0, 0)))

    row_map = _make_row_map(tpc)
    vmem_limit = _vmem_budget_bytes()

    # Pass 1: matmul + global per-channel sum / sum-of-squares partials.
    y_raw, part = pl.pallas_call(
        _matmul_stats_kernel,
        out_shape=(jax.ShapeDtypeStruct((Rp, OCp), jnp.bfloat16),
                   jax.ShapeDtypeStruct((nc * 8, OCp), jnp.float32)),
        grid_spec=pltpu.PrefetchScalarGridSpec(
            num_scalar_prefetch=0,
            grid=(nc, tpc),
            in_specs=[
                pl.BlockSpec((tm, Kp), row_map),
                _const_spec((Kp, OCp), lambda c, i: (0, 0)),
            ],
            out_specs=(
                pl.BlockSpec((tm, OCp), row_map),
                pl.BlockSpec((8, OCp), lambda c, i: (c, 0)),
            ),
            scratch_shapes=[pltpu.VMEM((1, OCp), jnp.float32),
                            pltpu.VMEM((1, OCp), jnp.float32)]),
        compiler_params=pltpu.CompilerParams(
            dimension_semantics=("parallel", "arbitrary"),
            vmem_limit_bytes=vmem_limit),
        cost_estimate=pl.CostEstimate(
            flops=int(2 * Rp * Kp * OCp),
            transcendentals=0,
            bytes_accessed=int(Rp * Kp * 2 + Kp * OCp * 2 + Rp * OCp * 2)),
    )(patches, w2d)

    # Fold the per-core partials + affine params into per-channel scale/shift
    # (tiny XLA op on a (nc*8, OCp) array).
    inv_count = 1.0 / R
    total_sum = jnp.sum(part[0::8], axis=0, keepdims=True)
    total_sq = jnp.sum(part[1::8], axis=0, keepdims=True)
    mean = total_sum * inv_count
    var = jnp.maximum(total_sq * inv_count - mean * mean, 0.0)
    scale = gamma * jax.lax.rsqrt(var + BN_EPS)
    shift = beta - mean * scale
    ss = jnp.concatenate([scale, shift], axis=0)     # (2, OCp) f32

    # Pass 2: fused scale/shift + LeakyReLU over the bf16 intermediate.
    act = pl.pallas_call(
        _bn_lrelu_apply_kernel,
        out_shape=jax.ShapeDtypeStruct((Rp, OCp), jnp.bfloat16),
        grid_spec=pltpu.PrefetchScalarGridSpec(
            num_scalar_prefetch=0,
            grid=(Rp // tm,),
            in_specs=[
                pl.BlockSpec((tm, OCp), lambda i: (i, 0)),
                _const_spec((2, OCp), lambda i: (0, 0)),
            ],
            out_specs=pl.BlockSpec((tm, OCp), lambda i: (i, 0))),
        compiler_params=pltpu.CompilerParams(
            dimension_semantics=("parallel",),
            vmem_limit_bytes=vmem_limit),
        cost_estimate=pl.CostEstimate(
            flops=int(3 * Rp * OCp),
            transcendentals=0,
            bytes_accessed=int(2 * Rp * OCp * 2)),
    )(y_raw, ss)
    return act[:R]


def conv_sigmoid(patches, w2d):
    """Final conv + sigmoid. Returns (R, OCp) f32 (OC padded to lane width)."""
    R = patches.shape[0]
    Kp, OCp = w2d.shape
    tm = _choose_row_tile(R, Kp, OCp)
    Rp = _round_up(R, tm)
    if patches.shape[0] != Rp:
        patches = jnp.pad(patches, ((0, Rp - R), (0, 0)))
    vmem_limit = _vmem_budget_bytes()

    out = pl.pallas_call(
        _matmul_sigmoid_kernel,
        out_shape=jax.ShapeDtypeStruct((Rp, OCp), jnp.float32),
        grid_spec=pltpu.PrefetchScalarGridSpec(
            num_scalar_prefetch=0,
            grid=(Rp // tm,),
            in_specs=[pl.BlockSpec((tm, Kp), lambda i: (i, 0)),
                      _const_spec((Kp, OCp), lambda i: (0, 0))],
            out_specs=pl.BlockSpec((tm, OCp), lambda i: (i, 0))),
        compiler_params=pltpu.CompilerParams(
            dimension_semantics=("parallel",),
            vmem_limit_bytes=vmem_limit),
        cost_estimate=pl.CostEstimate(
            flops=int(2 * Rp * Kp * OCp),
            transcendentals=int(Rp * OCp),
            bytes_accessed=int(Rp * Kp * 2 + Kp * OCp * 2 + Rp * OCp * 4)),
    )(patches, w2d)
    return out[:R]


# ---------------------------------------------------------------------------
# Plain-JAX glue: NHWC bf16 im2col, parameter construction, layer loop
# ---------------------------------------------------------------------------
def im2col_nhwc_bf16(x, k, stride, pad):
    """x: (N,H,W,C) -> bf16 patches (N*OH*OW, k*k*Cp) with (kh, kw, c) column
    order, Cp = round_up(C, 8).  The bf16 cast and the channel/K padding are
    folded into the single materialization of the patch matrix."""
    N, H, W, C = x.shape
    Cp = _round_up(C, 8)
    xp = jnp.pad(x.astype(jnp.bfloat16),
                 ((0, 0), (pad, pad), (pad, pad), (0, Cp - C)))
    OH = (H + 2 * pad - k) // stride + 1
    OW = (W + 2 * pad - k) // stride + 1
    taps = []
    for i in range(k):
        for j in range(k):
            taps.append(xp[:, i:i + stride * OH:stride,
                           j:j + stride * OW:stride, :])
    p = jnp.stack(taps, axis=3)                      # (N, OH, OW, k*k, Cp)
    return p.reshape(N * OH * OW, k * k * Cp), OH, OW


def make_discriminator_params(key, image_size, n_chan, n_dis_hidden):
    assert image_size % 16 == 0, "Image size should be a multiple of 16"
    # Replicates the layer construction loop of the PyTorch module.
    conv_defs = []
    in_c, out_c = n_chan, n_dis_hidden
    conv_defs.append((in_c, out_c, 4, 2, 1, True))       # conv + BN + LeakyReLU
    cur_size = image_size // 2
    while cur_size > 4:
        in_c, out_c = out_c, out_c * 2
        conv_defs.append((in_c, out_c, 4, 2, 1, True))
        cur_size //= 2
    conv_defs.append((out_c, 1, 4, 1, 0, False))          # final conv + Sigmoid

    params = []
    for (ic, oc, k, s, p, bn) in conv_defs:
        key, sub = jax.random.split(key)
        w = jax.random.normal(sub, (oc, ic, k, k), jnp.float32) * 0.02
        ICp = _round_up(ic, 8)
        Kp = _round_up(k * k * ICp, LANE)                 # = k*k*ICp for k=4
        OCp = _round_up(oc, LANE)
        # Hoisted weight prep: (OC,IC,kH,kW) -> (kH,kW,ICp,OC) -> (Kp,OCp) bf16,
        # matching the bf16 im2col column order (zero rows for padded channels).
        w4 = jnp.transpose(w, (2, 3, 1, 0))               # (kH, kW, IC, OC)
        w4 = jnp.pad(w4, ((0, 0), (0, 0), (0, ICp - ic), (0, 0)))
        w2d = w4.reshape(k * k * ICp, oc)
        w2d = _pad2d(w2d, Kp, OCp).astype(jnp.bfloat16)
        if bn:
            gamma = _pad2d(jnp.ones((1, oc), jnp.float32), 1, OCp)
            beta = jnp.zeros((1, OCp), jnp.float32)
        else:
            gamma = beta = None
        params.append(dict(w2d=w2d, gamma=gamma, beta=beta,
                           k=k, s=s, p=p, bn=bn, oc=oc))
    return params


def discriminator_forward(params, x):
    """x: (N, C, H, W) NCHW -> (N, 1), matching the PyTorch pass_.view(-1, 1)."""
    N = x.shape[0]
    h = jnp.transpose(x, (0, 2, 3, 1))            # keep activations NHWC
    for lp in params:
        patches, OH, OW = im2col_nhwc_bf16(h, lp["k"], lp["s"], lp["p"])
        Kp = lp["w2d"].shape[0]
        if patches.shape[1] != Kp:                # generic fallback (not hit for k=4)
            patches = jnp.pad(patches, ((0, 0), (0, Kp - patches.shape[1])))
        if lp["bn"]:
            y = conv_bn_lrelu(patches, lp["w2d"], lp["gamma"], lp["beta"])
        else:
            y = conv_sigmoid(patches, lp["w2d"])
        h = y[:, :lp["oc"]].reshape(N, OH, OW, lp["oc"])
    return h.reshape(-1, 1).astype(jnp.float32)


if __name__ == "__main__":
    # Small shapes consistent with the module: image_size multiple of 16.
    batch, n_chan, image_size, n_dis_hidden = 2, 4, 16, 8

    key = jax.random.PRNGKey(0)
    key, pkey, xkey = jax.random.split(key, 3)
    params = make_discriminator_params(pkey, image_size, n_chan, n_dis_hidden)
    x = jax.random.normal(xkey, (batch, n_chan, image_size, image_size), jnp.float32)

    out = jax.jit(lambda inp: discriminator_forward(params, inp))(x)
    out = jax.block_until_ready(out)

    assert out.shape == (batch, 1), out.shape
    assert bool(jnp.all(jnp.isfinite(out)))
    assert bool(jnp.all((out >= 0.0) & (out <= 1.0)))
    print("KERNEL_OK")
</pallas_src>

<mosaic_0001>
module attributes {stable_mosaic.version = 11 : i64} {
  func.func @_matmul_stats_kernel(%arg0: i32, %arg1: i32, %arg2: memref<128x128xbf16, #tpu.memory_space<vmem>>, %arg3: memref<128x128xbf16, #tpu.memory_space<vmem>>, %arg4: memref<128x128xbf16, #tpu.memory_space<vmem>>, %arg5: memref<8x128xf32, #tpu.memory_space<vmem>>, %arg6: memref<1x128xf32, #tpu.memory_space<vmem>>, %arg7: memref<1x128xf32, #tpu.memory_space<vmem>>) attributes {dimension_semantics = [#tpu.dimension_semantics<parallel>, #tpu.dimension_semantics<arbitrary>], iteration_bounds = array<i64: 1, 1>, scalar_prefetch = 0 : i64, scratch_operands = 2 : i64, tpu.core_type = #tpu.core_type<tc>, window_params = [{transform_indices = @transform_0, window_bounds = array<i64: 128, 128>}, {pipeline_mode = #tpu.pipeline_mode<synchronous>, transform_indices = @transform_1, window_bounds = array<i64: 128, 128>}, {transform_indices = @transform_2, window_bounds = array<i64: 128, 128>}, {transform_indices = @transform_3, window_bounds = array<i64: 8, 128>}]} {
    %c0_i32 = arith.constant 0 : i32
    %0 = arith.cmpi eq, %arg1, %c0_i32 : i32
    %1 = arith.extui %0 : i1 to i32
    %c0_i32_0 = arith.constant 0 : i32
    %2 = arith.cmpi ne, %1, %c0_i32_0 : i32
    scf.if %2 {
      %cst_18 = arith.constant 0.000000e+00 : f32
      %22 = vector.broadcast %cst_18 : f32 to vector<1x128xf32>
      %c0_19 = arith.constant 0 : index
      %c0_20 = arith.constant 0 : index
      %23 = vector.load %arg6[%c0_19, %c0_20] : memref<1x128xf32, #tpu.memory_space<vmem>>, vector<1x128xf32>
      tpu.vector_store %arg6[%c0_19, %c0_20], %22 {strides = array<i32>} : memref<1x128xf32, #tpu.memory_space<vmem>>, vector<1x128xf32>,
      %cst_21 = arith.constant 0.000000e+00 : f32
      %24 = vector.broadcast %cst_21 : f32 to vector<1x128xf32>
      %c0_22 = arith.constant 0 : index
      %c0_23 = arith.constant 0 : index
      %25 = vector.load %arg7[%c0_22, %c0_23] : memref<1x128xf32, #tpu.memory_space<vmem>>, vector<1x128xf32>
      tpu.vector_store %arg7[%c0_22, %c0_23], %24 {strides = array<i32>} : memref<1x128xf32, #tpu.memory_space<vmem>>, vector<1x128xf32>,
      %cst_24 = arith.constant 0.000000e+00 : f32
      %26 = vector.broadcast %cst_24 : f32 to vector<8x128xf32>
      %c0_25 = arith.constant 0 : index
      %c0_26 = arith.constant 0 : index
      %27 = vector.load %arg5[%c0_25, %c0_26] : memref<8x128xf32, #tpu.memory_space<vmem>>, vector<8x128xf32>
      tpu.vector_store %arg5[%c0_25, %c0_26], %26 {strides = array<i32>} : memref<8x128xf32, #tpu.memory_space<vmem>>, vector<8x128xf32>,
    } else {
    }
    %c0 = arith.constant 0 : index
    %c0_1 = arith.constant 0 : index
    %3 = vector.load %arg2[%c0, %c0_1] : memref<128x128xbf16, #tpu.memory_space<vmem>>, vector<128x128xbf16>
    %c0_2 = arith.constant 0 : index
    %c0_3 = arith.constant 0 : index
    %4 = vector.load %arg3[%c0_2, %c0_3] : memref<128x128xbf16, #tpu.memory_space<vmem>>, vector<128x128xbf16>
    %cst = arith.constant dense<0.000000e+00> : vector<128x128xf32>
    %5 = tpu.matmul %3, %4, %cst {dimension_numbers = #tpu.dot_dimension_numbers<[1], [0], [0], [1], [0, 0, 1, 1], [], []>} : vector<128x128xbf16>, vector<128x128xbf16>, vector<128x128xf32> -> vector<128x128xf32>
    %6 = arith.truncf %5 : vector<128x128xf32> to vector<128x128xbf16>
    %c0_4 = arith.constant 0 : index
    %c0_5 = arith.constant 0 : index
    %7 = vector.load %arg4[%c0_4, %c0_5] : memref<128x128xbf16, #tpu.memory_space<vmem>>, vector<128x128xbf16>
    tpu.vector_store %arg4[%c0_4, %c0_5], %6 {strides = array<i32>} : memref<128x128xbf16, #tpu.memory_space<vmem>>, vector<128x128xbf16>,
    %c0_6 = arith.constant 0 : index
    %c0_7 = arith.constant 0 : index
    %8 = vector.load %arg6[%c0_6, %c0_7] : memref<1x128xf32, #tpu.memory_space<vmem>>, vector<1x128xf32>
    %cst_8 = arith.constant dense<0.000000e+00> : vector<128xf32>
    %9 = vector.multi_reduction <add>, %5, %cst_8 [0] : vector<128x128xf32> to vector<128xf32>
    %10 = vector.shape_cast %9 : vector<128xf32> to vector<1x128xf32>
    %11 = arith.addf %8, %10 : vector<1x128xf32>
    %c0_9 = arith.constant 0 : index
    %c0_10 = arith.constant 0 : index
    %12 = vector.load %arg6[%c0_9, %c0_10] : memref<1x128xf32, #tpu.memory_space<vmem>>, vector<1x128xf32>
    tpu.vector_store %arg6[%c0_9, %c0_10], %11 {strides = array<i32>} : memref<1x128xf32, #tpu.memory_space<vmem>>, vector<1x128xf32>,
    %c0_11 = arith.constant 0 : index
    %c0_12 = arith.constant 0 : index
    %13 = vector.load %arg7[%c0_11, %c0_12] : memref<1x128xf32, #tpu.memory_space<vmem>>, vector<1x128xf32>
    %14 = arith.mulf %5, %5 : vector<128x128xf32>
    %cst_13 = arith.constant dense<0.000000e+00> : vector<128xf32>
    %15 = vector.multi_reduction <add>, %14, %cst_13 [0] : vector<128x128xf32> to vector<128xf32>
    %16 = vector.shape_cast %15 : vector<128xf32> to vector<1x128xf32>
    %17 = arith.addf %13, %16 : vector<1x128xf32>
    %c0_14 = arith.constant 0 : index
    %c0_15 = arith.constant 0 : index
    %18 = vector.load %arg7[%c0_14, %c0_15] : memref<1x128xf32, #tpu.memory_space<vmem>>, vector<1x128xf32>
    tpu.vector_store %arg7[%c0_14, %c0_15], %17 {strides = array<i32>} : memref<1x128xf32, #tpu.memory_space<vmem>>, vector<1x128xf32>,
    %c0_i32_16 = arith.constant 0 : i32
    %19 = arith.cmpi eq, %arg1, %c0_i32_16 : i32
    %20 = arith.extui %19 : i1 to i32
    %c0_i32_17 = arith.constant 0 : i32
    %21 = arith.cmpi ne, %20, %c0_i32_17 : i32
    scf.if %21 {
      %c0_18 = arith.constant 0 : index
      %c0_19 = arith.constant 0 : index
      %22 = vector.load %arg6[%c0_18, %c0_19] : memref<1x128xf32, #tpu.memory_space<vmem>>, vector<1x128xf32>
      %c0_20 = arith.constant 0 : index
      %c0_21 = arith.constant 0 : index
      %23 = vector.load %arg5[%c0_20, %c0_21] : memref<8x128xf32, #tpu.memory_space<vmem>>, vector<1x128xf32>
      tpu.vector_store %arg5[%c0_20, %c0_21], %22 {strides = array<i32>} : memref<8x128xf32, #tpu.memory_space<vmem>>, vector<1x128xf32>,
      %c0_22 = arith.constant 0 : index
      %c0_23 = arith.constant 0 : index
      %24 = vector.load %arg7[%c0_22, %c0_23] : memref<1x128xf32, #tpu.memory_space<vmem>>, vector<1x128xf32>
      %c1 = arith.constant 1 : index
      %c0_24 = arith.constant 0 : index
      %25 = vector.load %arg5[%c1, %c0_24] : memref<8x128xf32, #tpu.memory_space<vmem>>, vector<1x128xf32>
      tpu.vector_store %arg5[%c1, %c0_24], %24 {strides = array<i32>} : memref<8x128xf32, #tpu.memory_space<vmem>>, vector<1x128xf32>,
    } else {
    }
    return
  }
  func.func @transform_0(%arg0: i32, %arg1: i32) -> (i32, i32) {
    %c1_i32 = arith.constant 1 : i32
    %0 = arith.muli %arg0, %c1_i32 : i32
    %1 = arith.addi %0, %arg1 : i32
    %c0_i32 = arith.constant 0 : i32
    %c0_i32_0 = arith.constant 0 : i32
    return %1, %c0_i32 : i32, i32
  }
  func.func @transform_1(%arg0: i32, %arg1: i32) -> (i32, i32) {
    %c0_i32 = arith.constant 0 : i32
    %c0_i32_0 = arith.constant 0 : i32
    %c0_i32_1 = arith.constant 0 : i32
    return %c0_i32, %c0_i32_0 : i32, i32
  }
  func.func @transform_2(%arg0: i32, %arg1: i32) -> (i32, i32) {
    %c1_i32 = arith.constant 1 : i32
    %0 = arith.muli %arg0, %c1_i32 : i32
    %1 = arith.addi %0, %arg1 : i32
    %c0_i32 = arith.constant 0 : i32
    %c0_i32_0 = arith.constant 0 : i32
    return %1, %c0_i32 : i32, i32
  }
  func.func @transform_3(%arg0: i32, %arg1: i32) -> (i32, i32) {
    %c0_i32 = arith.constant 0 : i32
    %c0_i32_0 = arith.constant 0 : i32
    return %arg0, %c0_i32 : i32, i32
  }
}

module attributes {stable_mosaic.version = 11 : i64} {
  func.func @_bn_lrelu_apply_kernel(%arg0: i32, %arg1: memref<128x128xbf16, #tpu.memory_space<vmem>>, %arg2: memref<2x128xf32, #tpu.memory_space<vmem>>, %arg3: memref<128x128xbf16, #tpu.memory_space<vmem>>) attributes {dimension_semantics = [#tpu.dimension_semantics<parallel>], iteration_bounds = array<i64: 1>, scalar_prefetch = 0 : i64, scratch_operands = 0 : i64, tpu.core_type = #tpu.core_type<tc>, window_params = [{transform_indices = @transform_0, window_bounds = array<i64: 128, 128>}, {pipeline_mode = #tpu.pipeline_mode<synchronous>, transform_indices = @transform_1, window_bounds = array<i64: 2, 128>}, {transform_indices = @transform_2, window_bounds = array<i64: 128, 128>}]} {
    %c0 = arith.constant 0 : index
    %c0_0 = arith.constant 0 : index
    %0 = vector.load %arg2[%c0, %c0_0] : memref<2x128xf32, #tpu.memory_space<vmem>>, vector<1x128xf32>
    %c1 = arith.constant 1 : index
    %c0_1 = arith.constant 0 : index
    %1 = vector.load %arg2[%c1, %c0_1] : memref<2x128xf32, #tpu.memory_space<vmem>>, vector<1x128xf32>
    %c0_2 = arith.constant 0 : index
    %c0_3 = arith.constant 0 : index
    %2 = vector.load %arg1[%c0_2, %c0_3] : memref<128x128xbf16, #tpu.memory_space<vmem>>, vector<128x128xbf16>
    %3 = arith.extf %2 : vector<128x128xbf16> to vector<128x128xf32>
    %4 = vector.broadcast %0 : vector<1x128xf32> to vector<128x128xf32>
    %5 = arith.mulf %3, %4 : vector<128x128xf32>
    %6 = vector.broadcast %1 : vector<1x128xf32> to vector<128x128xf32>
    %7 = arith.addf %5, %6 : vector<128x128xf32>
    %cst = arith.constant 0.000000e+00 : f32
    %8 = vector.broadcast %cst : f32 to vector<128x128xf32>
    %9 = arith.cmpf oge, %7, %8 : vector<128x128xf32>
    %cst_4 = arith.constant 2.000000e-01 : f32
    %10 = vector.broadcast %cst_4 : f32 to vector<128x128xf32>
    %11 = arith.mulf %10, %7 : vector<128x128xf32>
    %12 = arith.select %9, %7, %11 : vector<128x128xi1>, vector<128x128xf32>
    %13 = arith.truncf %12 : vector<128x128xf32> to vector<128x128xbf16>
    %c0_5 = arith.constant 0 : index
    %c0_6 = arith.constant 0 : index
    %14 = vector.load %arg3[%c0_5, %c0_6] : memref<128x128xbf16, #tpu.memory_space<vmem>>, vector<128x128xbf16>
    tpu.vector_store %arg3[%c0_5, %c0_6], %13 {strides = array<i32>} : memref<128x128xbf16, #tpu.memory_space<vmem>>, vector<128x128xbf16>,
    return
  }
  func.func @transform_0(%arg0: i32) -> (i32, i32) {
    %c0_i32 = arith.constant 0 : i32
    %c0_i32_0 = arith.constant 0 : i32
    return %arg0, %c0_i32 : i32, i32
  }
  func.func @transform_1(%arg0: i32) -> (i32, i32) {
    %c0_i32 = arith.constant 0 : i32
    %c0_i32_0 = arith.constant 0 : i32
    %c0_i32_1 = arith.constant 0 : i32
    return %c0_i32, %c0_i32_0 : i32, i32
  }
  func.func @transform_2(%arg0: i32) -> (i32, i32) {
    %c0_i32 = arith.constant 0 : i32
    %c0_i32_0 = arith.constant 0 : i32
    return %arg0, %c0_i32 : i32, i32
  }
}

module attributes {stable_mosaic.version = 11 : i64} {
  func.func @_matmul_stats_kernel(%arg0: i32, %arg1: i32, %arg2: memref<32x128xbf16, #tpu.memory_space<vmem>>, %arg3: memref<128x128xbf16, #tpu.memory_space<vmem>>, %arg4: memref<32x128xbf16, #tpu.memory_space<vmem>>, %arg5: memref<8x128xf32, #tpu.memory_space<vmem>>, %arg6: memref<1x128xf32, #tpu.memory_space<vmem>>, %arg7: memref<1x128xf32, #tpu.memory_space<vmem>>) attributes {dimension_semantics = [#tpu.dimension_semantics<parallel>, #tpu.dimension_semantics<arbitrary>], iteration_bounds = array<i64: 1, 1>, scalar_prefetch = 0 : i64, scratch_operands = 2 : i64, tpu.core_type = #tpu.core_type<tc>, window_params = [{transform_indices = @transform_0, window_bounds = array<i64: 32, 128>}, {pipeline_mode = #tpu.pipeline_mode<synchronous>, transform_indices = @transform_1, window_bounds = array<i64: 128, 128>}, {transform_indices = @transform_2, window_bounds = array<i64: 32, 128>}, {transform_indices = @transform_3, window_bounds = array<i64: 8, 128>}]} {
    %c0_i32 = arith.constant 0 : i32
    %0 = arith.cmpi eq, %arg1, %c0_i32 : i32
    %1 = arith.extui %0 : i1 to i32
    %c0_i32_0 = arith.constant 0 : i32
    %2 = arith.cmpi ne, %1, %c0_i32_0 : i32
    scf.if %2 {
      %cst_18 = arith.constant 0.000000e+00 : f32
      %22 = vector.broadcast %cst_18 : f32 to vector<1x128xf32>
      %c0_19 = arith.constant 0 : index
      %c0_20 = arith.constant 0 : index
      %23 = vector.load %arg6[%c0_19, %c0_20] : memref<1x128xf32, #tpu.memory_space<vmem>>, vector<1x128xf32>
      tpu.vector_store %arg6[%c0_19, %c0_20], %22 {strides = array<i32>} : memref<1x128xf32, #tpu.memory_space<vmem>>, vector<1x128xf32>,
      %cst_21 = arith.constant 0.000000e+00 : f32
      %24 = vector.broadcast %cst_21 : f32 to vector<1x128xf32>
      %c0_22 = arith.constant 0 : index
      %c0_23 = arith.constant 0 : index
      %25 = vector.load %arg7[%c0_22, %c0_23] : memref<1x128xf32, #tpu.memory_space<vmem>>, vector<1x128xf32>
      tpu.vector_store %arg7[%c0_22, %c0_23], %24 {strides = array<i32>} : memref<1x128xf32, #tpu.memory_space<vmem>>, vector<1x128xf32>,
      %cst_24 = arith.constant 0.000000e+00 : f32
      %26 = vector.broadcast %cst_24 : f32 to vector<8x128xf32>
      %c0_25 = arith.constant 0 : index
      %c0_26 = arith.constant 0 : index
      %27 = vector.load %arg5[%c0_25, %c0_26] : memref<8x128xf32, #tpu.memory_space<vmem>>, vector<8x128xf32>
      tpu.vector_store %arg5[%c0_25, %c0_26], %26 {strides = array<i32>} : memref<8x128xf32, #tpu.memory_space<vmem>>, vector<8x128xf32>,
    } else {
    }
    %c0 = arith.constant 0 : index
    %c0_1 = arith.constant 0 : index
    %3 = vector.load %arg2[%c0, %c0_1] : memref<32x128xbf16, #tpu.memory_space<vmem>>, vector<32x128xbf16>
    %c0_2 = arith.constant 0 : index
    %c0_3 = arith.constant 0 : index
    %4 = vector.load %arg3[%c0_2, %c0_3] : memref<128x128xbf16, #tpu.memory_space<vmem>>, vector<128x128xbf16>
    %cst = arith.constant dense<0.000000e+00> : vector<32x128xf32>
    %5 = tpu.matmul %3, %4, %cst {dimension_numbers = #tpu.dot_dimension_numbers<[1], [0], [0], [1], [0, 0, 1, 1], [], []>} : vector<32x128xbf16>, vector<128x128xbf16>, vector<32x128xf32> -> vector<32x128xf32>
    %6 = arith.truncf %5 : vector<32x128xf32> to vector<32x128xbf16>
    %c0_4 = arith.constant 0 : index
    %c0_5 = arith.constant 0 : index
    %7 = vector.load %arg4[%c0_4, %c0_5] : memref<32x128xbf16, #tpu.memory_space<vmem>>, vector<32x128xbf16>
    tpu.vector_store %arg4[%c0_4, %c0_5], %6 {strides = array<i32>} : memref<32x128xbf16, #tpu.memory_space<vmem>>, vector<32x128xbf16>,
    %c0_6 = arith.constant 0 : index
    %c0_7 = arith.constant 0 : index
    %8 = vector.load %arg6[%c0_6, %c0_7] : memref<1x128xf32, #tpu.memory_space<vmem>>, vector<1x128xf32>
    %cst_8 = arith.constant dense<0.000000e+00> : vector<128xf32>
    %9 = vector.multi_reduction <add>, %5, %cst_8 [0] : vector<32x128xf32> to vector<128xf32>
    %10 = vector.shape_cast %9 : vector<128xf32> to vector<1x128xf32>
    %11 = arith.addf %8, %10 : vector<1x128xf32>
    %c0_9 = arith.constant 0 : index
    %c0_10 = arith.constant 0 : index
    %12 = vector.load %arg6[%c0_9, %c0_10] : memref<1x128xf32, #tpu.memory_space<vmem>>, vector<1x128xf32>
    tpu.vector_store %arg6[%c0_9, %c0_10], %11 {strides = array<i32>} : memref<1x128xf32, #tpu.memory_space<vmem>>, vector<1x128xf32>,
    %c0_11 = arith.constant 0 : index
    %c0_12 = arith.constant 0 : index
    %13 = vector.load %arg7[%c0_11, %c0_12] : memref<1x128xf32, #tpu.memory_space<vmem>>, vector<1x128xf32>
    %14 = arith.mulf %5, %5 : vector<32x128xf32>
    %cst_13 = arith.constant dense<0.000000e+00> : vector<128xf32>
    %15 = vector.multi_reduction <add>, %14, %cst_13 [0] : vector<32x128xf32> to vector<128xf32>
    %16 = vector.shape_cast %15 : vector<128xf32> to vector<1x128xf32>
    %17 = arith.addf %13, %16 : vector<1x128xf32>
    %c0_14 = arith.constant 0 : index
    %c0_15 = arith.constant 0 : index
    %18 = vector.load %arg7[%c0_14, %c0_15] : memref<1x128xf32, #tpu.memory_space<vmem>>, vector<1x128xf32>
    tpu.vector_store %arg7[%c0_14, %c0_15], %17 {strides = array<i32>} : memref<1x128xf32, #tpu.memory_space<vmem>>, vector<1x128xf32>,
    %c0_i32_16 = arith.constant 0 : i32
    %19 = arith.cmpi eq, %arg1, %c0_i32_16 : i32
    %20 = arith.extui %19 : i1 to i32
    %c0_i32_17 = arith.constant 0 : i32
    %21 = arith.cmpi ne, %20, %c0_i32_17 : i32
    scf.if %21 {
      %c0_18 = arith.constant 0 : index
      %c0_19 = arith.constant 0 : index
      %22 = vector.load %arg6[%c0_18, %c0_19] : memref<1x128xf32, #tpu.memory_space<vmem>>, vector<1x128xf32>
      %c0_20 = arith.constant 0 : index
      %c0_21 = arith.constant 0 : index
      %23 = vector.load %arg5[%c0_20, %c0_21] : memref<8x128xf32, #tpu.memory_space<vmem>>, vector<1x128xf32>
      tpu.vector_store %arg5[%c0_20, %c0_21], %22 {strides = array<i32>} : memref<8x128xf32, #tpu.memory_space<vmem>>, vector<1x128xf32>,
      %c0_22 = arith.constant 0 : index
      %c0_23 = arith.constant 0 : index
      %24 = vector.load %arg7[%c0_22, %c0_23] : memref<1x128xf32, #tpu.memory_space<vmem>>, vector<1x128xf32>
      %c1 = arith.constant 1 : index
      %c0_24 = arith.constant 0 : index
      %25 = vector.load %arg5[%c1, %c0_24] : memref<8x128xf32, #tpu.memory_space<vmem>>, vector<1x128xf32>
      tpu.vector_store %arg5[%c1, %c0_24], %24 {strides = array<i32>} : memref<8x128xf32, #tpu.memory_space<vmem>>, vector<1x128xf32>,
    } else {
    }
    return
  }
  func.func @transform_0(%arg0: i32, %arg1: i32) -> (i32, i32) {
    %c1_i32 = arith.constant 1 : i32
    %0 = arith.muli %arg0, %c1_i32 : i32
    %1 = arith.addi %0, %arg1 : i32
    %c0_i32 = arith.constant 0 : i32
    %c0_i32_0 = arith.constant 0 : i32
    return %1, %c0_i32 : i32, i32
  }
  func.func @transform_1(%arg0: i32, %arg1: i32) -> (i32, i32) {
    %c0_i32 = arith.constant 0 : i32
    %c0_i32_0 = arith.constant 0 : i32
    %c0_i32_1 = arith.constant 0 : i32
    return %c0_i32, %c0_i32_0 : i32, i32
  }
  func.func @transform_2(%arg0: i32, %arg1: i32) -> (i32, i32) {
    %c1_i32 = arith.constant 1 : i32
    %0 = arith.muli %arg0, %c1_i32 : i32
    %1 = arith.addi %0, %arg1 : i32
    %c0_i32 = arith.constant 0 : i32
    %c0_i32_0 = arith.constant 0 : i32
    return %1, %c0_i32 : i32, i32
  }
  func.func @transform_3(%arg0: i32, %arg1: i32) -> (i32, i32) {
    %c0_i32 = arith.constant 0 : i32
    %c0_i32_0 = arith.constant 0 : i32
    return %arg0, %c0_i32 : i32, i32
  }
}

module attributes {stable_mosaic.version = 11 : i64} {
  func.func @_bn_lrelu_apply_kernel(%arg0: i32, %arg1: memref<32x128xbf16, #tpu.memory_space<vmem>>, %arg2: memref<2x128xf32, #tpu.memory_space<vmem>>, %arg3: memref<32x128xbf16, #tpu.memory_space<vmem>>) attributes {dimension_semantics = [#tpu.dimension_semantics<parallel>], iteration_bounds = array<i64: 1>, scalar_prefetch = 0 : i64, scratch_operands = 0 : i64, tpu.core_type = #tpu.core_type<tc>, window_params = [{transform_indices = @transform_0, window_bounds = array<i64: 32, 128>}, {pipeline_mode = #tpu.pipeline_mode<synchronous>, transform_indices = @transform_1, window_bounds = array<i64: 2, 128>}, {transform_indices = @transform_2, window_bounds = array<i64: 32, 128>}]} {
    %c0 = arith.constant 0 : index
    %c0_0 = arith.constant 0 : index
    %0 = vector.load %arg2[%c0, %c0_0] : memref<2x128xf32, #tpu.memory_space<vmem>>, vector<1x128xf32>
    %c1 = arith.constant 1 : index
    %c0_1 = arith.constant 0 : index
    %1 = vector.load %arg2[%c1, %c0_1] : memref<2x128xf32, #tpu.memory_space<vmem>>, vector<1x128xf32>
    %c0_2 = arith.constant 0 : index
    %c0_3 = arith.constant 0 : index
    %2 = vector.load %arg1[%c0_2, %c0_3] : memref<32x128xbf16, #tpu.memory_space<vmem>>, vector<32x128xbf16>
    %3 = arith.extf %2 : vector<32x128xbf16> to vector<32x128xf32>
    %4 = vector.broadcast %0 : vector<1x128xf32> to vector<32x128xf32>
    %5 = arith.mulf %3, %4 : vector<32x128xf32>
    %6 = vector.broadcast %1 : vector<1x128xf32> to vector<32x128xf32>
    %7 = arith.addf %5, %6 : vector<32x128xf32>
    %cst = arith.constant 0.000000e+00 : f32
    %8 = vector.broadcast %cst : f32 to vector<32x128xf32>
    %9 = arith.cmpf oge, %7, %8 : vector<32x128xf32>
    %cst_4 = arith.constant 2.000000e-01 : f32
    %10 = vector.broadcast %cst_4 : f32 to vector<32x128xf32>
    %11 = arith.mulf %10, %7 : vector<32x128xf32>
    %12 = arith.select %9, %7, %11 : vector<32x128xi1>, vector<32x128xf32>
    %13 = arith.truncf %12 : vector<32x128xf32> to vector<32x128xbf16>
    %c0_5 = arith.constant 0 : index
    %c0_6 = arith.constant 0 : index
    %14 = vector.load %arg3[%c0_5, %c0_6] : memref<32x128xbf16, #tpu.memory_space<vmem>>, vector<32x128xbf16>
    tpu.vector_store %arg3[%c0_5, %c0_6], %13 {strides = array<i32>} : memref<32x128xbf16, #tpu.memory_space<vmem>>, vector<32x128xbf16>,
    return
  }
  func.func @transform_0(%arg0: i32) -> (i32, i32) {
    %c0_i32 = arith.constant 0 : i32
    %c0_i32_0 = arith.constant 0 : i32
    return %arg0, %c0_i32 : i32, i32
  }
  func.func @transform_1(%arg0: i32) -> (i32, i32) {
    %c0_i32 = arith.constant 0 : i32
    %c0_i32_0 = arith.constant 0 : i32
    %c0_i32_1 = arith.constant 0 : i32
    return %c0_i32, %c0_i32_0 : i32, i32
  }
  func.func @transform_2(%arg0: i32) -> (i32, i32) {
    %c0_i32 = arith.constant 0 : i32
    %c0_i32_0 = arith.constant 0 : i32
    return %arg0, %c0_i32 : i32, i32
  }
}

module attributes {stable_mosaic.version = 11 : i64} {
  func.func @_matmul_sigmoid_kernel(%arg0: i32, %arg1: memref<16x256xbf16, #tpu.memory_space<vmem>>, %arg2: memref<256x128xbf16, #tpu.memory_space<vmem>>, %arg3: memref<16x128xf32, #tpu.memory_space<vmem>>) attributes {dimension_semantics = [#tpu.dimension_semantics<parallel>], iteration_bounds = array<i64: 1>, scalar_prefetch = 0 : i64, scratch_operands = 0 : i64, tpu.core_type = #tpu.core_type<tc>, window_params = [{transform_indices = @transform_0, window_bounds = array<i64: 16, 256>}, {pipeline_mode = #tpu.pipeline_mode<synchronous>, transform_indices = @transform_1, window_bounds = array<i64: 256, 128>}, {transform_indices = @transform_2, window_bounds = array<i64: 16, 128>}]} {
    %c0 = arith.constant 0 : index
    %c0_0 = arith.constant 0 : index
    %0 = vector.load %arg1[%c0, %c0_0] : memref<16x256xbf16, #tpu.memory_space<vmem>>, vector<16x256xbf16>
    %c0_1 = arith.constant 0 : index
    %c0_2 = arith.constant 0 : index
    %1 = vector.load %arg2[%c0_1, %c0_2] : memref<256x128xbf16, #tpu.memory_space<vmem>>, vector<256x128xbf16>
    %cst = arith.constant dense<0.000000e+00> : vector<16x128xf32>
    %2 = tpu.matmul %0, %1, %cst {dimension_numbers = #tpu.dot_dimension_numbers<[1], [0], [0], [1], [0, 0, 1, 1], [], []>} : vector<16x256xbf16>, vector<256x128xbf16>, vector<16x128xf32> -> vector<16x128xf32>
    %3 = arith.negf %2 : vector<16x128xf32>
    %4 = math.exp %3 : vector<16x128xf32>
    %cst_3 = arith.constant 1.000000e+00 : f32
    %5 = vector.broadcast %cst_3 : f32 to vector<16x128xf32>
    %6 = arith.addf %5, %4 : vector<16x128xf32>
    %7 = arith.divf %5, %6 : vector<16x128xf32>
    %c0_4 = arith.constant 0 : index
    %c0_5 = arith.constant 0 : index
    %8 = vector.load %arg3[%c0_4, %c0_5] : memref<16x128xf32, #tpu.memory_space<vmem>>, vector<16x128xf32>
    tpu.vector_store %arg3[%c0_4, %c0_5], %7 {strides = array<i32>} : memref<16x128xf32, #tpu.memory_space<vmem>>, vector<16x128xf32>,
    return
  }
  func.func @transform_0(%arg0: i32) -> (i32, i32) {
    %c0_i32 = arith.constant 0 : i32
    %c0_i32_0 = arith.constant 0 : i32
    return %arg0, %c0_i32 : i32, i32
  }
  func.func @transform_1(%arg0: i32) -> (i32, i32) {
    %c0_i32 = arith.constant 0 : i32
    %c0_i32_0 = arith.constant 0 : i32
    %c0_i32_1 = arith.constant 0 : i32
    return %c0_i32, %c0_i32_0 : i32, i32
  }
  func.func @transform_2(%arg0: i32) -> (i32, i32) {
    %c0_i32 = arith.constant 0 : i32
    %c0_i32_0 = arith.constant 0 : i32
    return %arg0, %c0_i32 : i32, i32
  }
}

</mosaic_0001>

<bundles_post_ra>
// kernel: _lambda_.6
= control target key start
LH: loop header
LB: loop body
LE: loop exit
PB: predicated region body
PF: predicated region fallthrough
CT: control target
= control target key end

     0   :  { %s443_s0 = inlined_call_operand.vmem [shape: bf16[128,128], index: 0, kind: input, shape index: {}]   ;;  %s444_s1 = inlined_call_operand.vmem [shape: f32[2,128], index: 1, kind: input, shape index: {}]   ;;  %s445_s2 = inlined_call_operand.vmem [shape: bf16[128,128], index: 2, kind: output, shape index: {}]  }
   0x1   :  { %v355_v0 = vld [vmem:[%s444_s1] ss:$0 sm:$0xff]  ;;  %v323_v4 = vld [vmem:[%s443_s0 + $0x8] sm:$0xff]   ;;  %v324_v5 = vld [vmem:[%s443_s0 + $0x10] sm:$0xff]  }
   0x2   :  { %v252_v1 = vld [vmem:[%s443_s0] sm:$0xff]   ;;  %v325_v6 = vld [vmem:[%s443_s0 + $0x18] sm:$0xff]   ;;  %v257_v8 = vunpack.c.l.bf16 %v323_v4  ;;  %v258_v9 = vunpack.c.h.bf16 %v323_v4  ;;  %v261_v10 = vunpack.c.l.bf16 %v324_v5  ;;  %v262_v11 = vunpack.c.h.bf16 %v324_v5  ;;  %v327_v35 = vld [vmem:[%s443_s0 + $0x28] sm:$0xff]  }
   0x3   :  { %v253_v2 = vunpack.c.l.bf16 %v252_v1  ;;  %v254_v3 = vunpack.c.h.bf16 %v252_v1  ;;  %v372_v7 = vld [vmem:[%s444_s1 + $0x1] ss:$0 sm:$0xff]  ;;  %v265_v14 = vunpack.c.l.bf16 %v325_v6  ;;  %v266_v15 = vunpack.c.h.bf16 %v325_v6  ;;  %v328_v48 = vld [vmem:[%s443_s0 + $0x30] sm:$0xff]   ;;  %v329_v4 = vld [vmem:[%s443_s0 + $0x38] sm:$0xff]  }
   0x4   :  { %v51_v16 = vmul.f32 %v257_v8, %v355_v0  ;;  %v52_v17 = vmul.f32 %v258_v9, %v355_v0  ;;  %v53_v18 = vmul.f32 %v261_v10, %v355_v0  ;;  %v54_v19 = vmul.f32 %v262_v11, %v355_v0  ;;  %v326_v34 = vld [vmem:[%s443_s0 + $0x20] sm:$0xff]  }
   0x5   :  { %v49_v12 = vmul.f32 %v253_v2, %v355_v0  ;;  %v50_v13 = vmul.f32 %v254_v3, %v355_v0  ;;  %v55_v22 = vmul.f32 %v265_v14, %v355_v0  ;;  %v56_v23 = vmul.f32 %v266_v15, %v355_v0 }
   0x6   :  { %v71_v24 = vadd.f32 %v372_v7, %v51_v16  ;;  %v72_v25 = vadd.f32 %v372_v7, %v52_v17  ;;  %v73_v26 = vadd.f32 %v372_v7, %v53_v18  ;;  %v74_v27 = vadd.f32 %v372_v7, %v54_v19 }
   0x7   :  { %v69_v20 = vadd.f32 %v372_v7, %v49_v12  ;;  %v70_v21 = vadd.f32 %v372_v7, %v50_v13  ;;  %v75_v42 = vadd.f32 %v372_v7, %v55_v22  ;;  %v76_v43 = vadd.f32 %v372_v7, %v56_v23 }
   0x8   :  { %vm87_vm2 = vcmp.ge.f32.partialorder %v71_v24, 0.0  ;;  %vm88_vm3 = vcmp.ge.f32.partialorder %v72_v25, 0.0  ;;  %v103_v30 = vmul.f32 0.2, %v71_v24  ;;  %v104_v31 = vmul.f32 0.2, %v72_v25 }
   0x9   :  { %vm85_vm0 = vcmp.ge.f32.partialorder %v69_v20, 0.0  ;;  %vm86_vm1 = vcmp.ge.f32.partialorder %v70_v21, 0.0  ;;  %v101_v28 = vmul.f32 0.2, %v69_v20  ;;  %v102_v29 = vmul.f32 0.2, %v70_v21 }
   0xa   :  { %vm89_vm4 = vcmp.ge.f32.partialorder %v73_v26, 0.0  ;;  %vm90_vm5 = vcmp.ge.f32.partialorder %v74_v27, 0.0  ;;  %v119_v37 = vsel %vm87_vm2, %v71_v24, %v103_v30  ;;  %v120_v38 = vsel %vm88_vm3, %v72_v25, %v104_v31 }
   0xb   :  { %v117_v32 = vsel %vm85_vm0, %v69_v20, %v101_v28  ;;  %v118_v33 = vsel %vm86_vm1, %v70_v21, %v102_v29  ;;  %v105_v39 = vmul.f32 0.2, %v73_v26  ;;  %v291_v40 = vpack.c.bf16 %v120_v38, %v119_v37 }
   0xc   :  { %v286_v36 = vpack.c.bf16 %v118_v33, %v117_v32  ;;  %v106_v41 = vmul.f32 0.2, %v74_v27  ;;  %v269_v45 = vunpack.c.l.bf16 %v326_v34  ;;  %v270_v46 = vunpack.c.h.bf16 %v326_v34 }
   0xd   :  { %v121_v44 = vsel %vm89_vm4, %v73_v26, %v105_v39  ;;  %v273_v47 = vunpack.c.l.bf16 %v327_v35  ;;  %330 = vst [vmem:[%s445_s2 + $0x8] sm:$0xff] %v291_v40   ;;  %vm91_vm6 = vcmp.ge.f32.partialorder %v75_v42, 0.0  ;;  %vm92_vm7 = vcmp.ge.f32.partialorder %v76_v43, 0.0 }
   0xe   :  { %287 = vst [vmem:[%s445_s2] sm:$0xff] %v286_v36   ;;  %v122_v49 = vsel %vm90_vm5, %v74_v27, %v106_v41  ;;  %v107_v50 = vmul.f32 0.2, %v75_v42  ;;  %v108_v52 = vmul.f32 0.2, %v76_v43  ;;  %v57_v53 = vmul.f32 %v269_v45, %v355_v0 }
   0xf   :  { %v296_v51 = vpack.c.bf16 %v122_v49, %v121_v44  ;;  %v58_v54 = vmul.f32 %v270_v46, %v355_v0  ;;  %v274_v56 = vunpack.c.h.bf16 %v327_v35  ;;  %v59_v57 = vmul.f32 %v273_v47, %v355_v0 }
  0x10   :  { %v123_v55 = vsel %vm91_vm6, %v75_v42, %v107_v50  ;;  %v277_v58 = vunpack.c.l.bf16 %v328_v48  ;;  %v124_v59 = vsel %vm92_vm7, %v76_v43, %v108_v52  ;;  %v77_v60 = vadd.f32 %v372_v7, %v57_v53 }
  0x11   :  { %331 = vst [vmem:[%s445_s2 + $0x10] sm:$0xff] %v296_v51   ;;  %v78_v61 = vadd.f32 %v372_v7, %v58_v54  ;;  %v278_v62 = vunpack.c.h.bf16 %v328_v48  ;;  %v301_v63 = vpack.c.bf16 %v124_v59, %v123_v55  ;;  %v60_v1 = vmul.f32 %v274_v56, %v355_v0 }
  0x12   :  { %v79_v2 = vadd.f32 %v372_v7, %v59_v57  ;;  %v61_v3 = vmul.f32 %v277_v58, %v355_v0  ;;  %vm93_vm8 = vcmp.ge.f32.partialorder %v77_v60, 0.0  ;;  %v109_v5 = vmul.f32 0.2, %v77_v60 }
  0x13   :  { %vm94_vm9 = vcmp.ge.f32.partialorder %v78_v61, 0.0  ;;  %v110_v6 = vmul.f32 0.2, %v78_v61  ;;  %332 = vst [vmem:[%s445_s2 + $0x18] sm:$0xff] %v301_v63   ;;  %v80_v8 = vadd.f32 %v372_v7, %v60_v1  ;;  %v62_v10 = vmul.f32 %v278_v62, %v355_v0 }
  0x14   :  { %vm95_vm10 = vcmp.ge.f32.partialorder %v79_v2, 0.0  ;;  %v111_v9 = vmul.f32 0.2, %v79_v2  ;;  %v125_v11 = vsel %vm93_vm8, %v77_v60, %v109_v5  ;;  %v81_v13 = vadd.f32 %v372_v7, %v61_v3 }
  0x15   :  { %v126_v12 = vsel %vm94_vm9, %v78_v61, %v110_v6  ;;  %v281_v14 = vunpack.c.l.bf16 %v329_v4  ;;  %vm96_vm11 = vcmp.ge.f32.partialorder %v80_v8, 0.0  ;;  %v112_v16 = vmul.f32 0.2, %v80_v8 }
  0x16   :  { %v306_v15 = vpack.c.bf16 %v126_v12, %v125_v11  ;;  %v127_v17 = vsel %vm95_vm10, %v79_v2, %v111_v9  ;;  %v82_v18 = vadd.f32 %v372_v7, %v62_v10  ;;  %vm97_vm12 = vcmp.ge.f32.partialorder %v81_v13, 0.0 }
  0x17   :  { %v113_v19 = vmul.f32 0.2, %v81_v13  ;;  %v282_v20 = vunpack.c.h.bf16 %v329_v4  ;;  %v128_v21 = vsel %vm96_vm11, %v80_v8, %v112_v16  ;;  %v63_v22 = vmul.f32 %v281_v14, %v355_v0 }
  0x18   :  { %333 = vst [vmem:[%s445_s2 + $0x20] sm:$0xff] %v306_v15   ;;  %v311_v23 = vpack.c.bf16 %v128_v21, %v127_v17  ;;  %vm98_vm13 = vcmp.ge.f32.partialorder %v82_v18, 0.0  ;;  %v114_v24 = vmul.f32 0.2, %v82_v18 }
  0x19   :  { %v129_v25 = vsel %vm97_vm12, %v81_v13, %v113_v19  ;;  %v64_v26 = vmul.f32 %v282_v20, %v355_v0  ;;  %v83_v27 = vadd.f32 %v372_v7, %v63_v22 }
  0x1a   :  { %334 = vst [vmem:[%s445_s2 + $0x28] sm:$0xff] %v311_v23   ;;  %v130_v28 = vsel %vm98_vm13, %v82_v18, %v114_v24 }
  0x1b   :  { %v316_v29 = vpack.c.bf16 %v130_v28, %v129_v25  ;;  %v84_v30 = vadd.f32 %v372_v7, %v64_v26  ;;  %vm99_vm14 = vcmp.ge.f32.partialorder %v83_v27, 0.0  ;;  %v115_v31 = vmul.f32 0.2, %v83_v27 }
  0x1d   :  { %335 = vst [vmem:[%s445_s2 + $0x30] sm:$0xff] %v316_v29   ;;  %vm100_vm15 = vcmp.ge.f32.partialorder %v84_v30, 0.0  ;;  %v116_v32 = vmul.f32 0.2, %v84_v30  ;;  %v131_v33 = vsel %vm99_vm14, %v83_v27, %v115_v31 }
  0x1f   :  { %v132_v0 = vsel %vm100_vm15, %v84_v30, %v116_v32 }
  0x20   :  { %v321_v34 = vpack.c.bf16 %v132_v0, %v131_v33 }
  0x22   :  { %336 = vst [vmem:[%s445_s2 + $0x38] sm:$0xff] %v321_v34  }

// kernel: _lambda_.5
= control target key start
LH: loop header
LB: loop body
LE: loop exit
PB: predicated region body
PF: predicated region fallthrough
CT: control target
= control target key end

     0   :  { %v645_v16 = vmov 0.0   ;;  %s747_s1 = inlined_call_operand.vmem [shape: bf16[128,128], index: 1, kind: input, shape index: {}]   ;;  %s748_s0 = inlined_call_operand.vmem [shape: bf16[128,128], index: 0, kind: input, shape index: {}]   ;;  %s749_s3 = inlined_call_operand.vmem [shape: f32[8,128], index: 3, kind: output, shape index: {1}]   ;;  %s750_s2 = inlined_call_operand.vmem [shape: bf16[128,128], index: 2, kind: output, shape index: {0}]  }
   0x1   :  { %v629_v0 = vld [vmem:[%s747_s1] sm:$0xff]   ;;  %v630_v1 = vld [vmem:[%s747_s1 + $0x8] sm:$0xff]   ;;  %v631_v2 = vld [vmem:[%s747_s1 + $0x10] sm:$0xff]   ;;  %54 = vst [vmem:[#allocation2] sm:$0x1] %v645_v16 }
   0x2   :  { %580 = vmatprep.subr.bf16.mxu0 %v629_v0  ;;  %612 = vmatprep.subr.bf16.mxu1 %v629_v0  ;;  %v632_v3 = vld [vmem:[%s747_s1 + $0x18] sm:$0xff]   ;;  %v637_v4 = vld [vmem:[%s748_s0] sm:$0xff]   ;;  %v634_v7 = vld [vmem:[%s747_s1 + $0x28] sm:$0xff]   ;;  %55 = vst [vmem:[#allocation3] sm:$0x1] %v645_v16 }
   0x3   :  { %581 = vmatpush3.bf16.msra.mxu0 %v629_v0  ;;  %620 = vmatpush3.bf16.msra.mxu1 %v629_v0  ;;  %v633_v5 = vld [vmem:[%s747_s1 + $0x20] sm:$0xff]   ;;  %v635_v8 = vld [vmem:[%s747_s1 + $0x30] sm:$0xff]   ;;  %v636_v9 = vld [vmem:[%s747_s1 + $0x38] sm:$0xff]   ;;  %56 = vst [vmem:[%s749_s3] sm:$0xff] %v645_v16 }
   0x4   :  { %582 = vmatprep.subr.bf16.mxu0 %v630_v1  ;;  %613 = vmatprep.subr.bf16.mxu1 %v630_v1  ;;  %v641_v6 = vld [vmem:[%s748_s0 + $0x20] sm:$0xff]   ;;  %v638_v10 = vld [vmem:[%s748_s0 + $0x8] sm:$0xff]   ;;  %v639_v12 = vld [vmem:[%s748_s0 + $0x10] sm:$0xff]  }
   0x5   :  { %596 = vmatprep.mubr.bf16.mxu0 %v637_v4  ;;  %604 = vmatprep.mubr.bf16.mxu1 %v641_v6  ;;  %v642_v11 = vld [vmem:[%s748_s0 + $0x28] sm:$0xff]   ;;  %v643_v13 = vld [vmem:[%s748_s0 + $0x30] sm:$0xff]   ;;  %v640_v14 = vld [vmem:[%s748_s0 + $0x18] sm:$0xff]  }
   0x6   :  { %v644_v15 = vld [vmem:[%s748_s0 + $0x38] sm:$0xff]  }
   0x7   :  { %583 = vmatpush3.bf16.msra.mxu0 %v630_v1  ;;  %621 = vmatpush3.bf16.msra.mxu1 %v630_v1 }
   0x8   :  { %584 = vmatprep.subr.bf16.mxu0 %v631_v2  ;;  %614 = vmatprep.subr.bf16.mxu1 %v631_v2 }
   0xb   :  { %585 = vmatpush3.bf16.msra.mxu0 %v631_v2  ;;  %622 = vmatpush3.bf16.msra.mxu1 %v631_v2 }
   0xc   :  { %586 = vmatprep.subr.bf16.mxu0 %v632_v3  ;;  %615 = vmatprep.subr.bf16.mxu1 %v632_v3 }
   0xf   :  { %587 = vmatpush3.bf16.msra.mxu0 %v632_v3  ;;  %623 = vmatpush3.bf16.msra.mxu1 %v632_v3 }
  0x10   :  { %588 = vmatprep.subr.bf16.mxu0 %v633_v5  ;;  %616 = vmatprep.subr.bf16.mxu1 %v633_v5 }
  0x13   :  { %589 = vmatpush3.bf16.msra.mxu0 %v633_v5  ;;  %624 = vmatpush3.bf16.msra.mxu1 %v633_v5 }
  0x14   :  { %590 = vmatprep.subr.bf16.mxu0 %v634_v7  ;;  %617 = vmatprep.subr.bf16.mxu1 %v634_v7 }
  0x17   :  { %591 = vmatpush3.bf16.msra.mxu0 %v634_v7  ;;  %625 = vmatpush3.bf16.msra.mxu1 %v634_v7 }
  0x18   :  { %592 = vmatprep.subr.bf16.mxu0 %v635_v8  ;;  %618 = vmatprep.subr.bf16.mxu1 %v635_v8 }
  0x1b   :  { %593 = vmatpush3.bf16.msra.mxu0 %v635_v8  ;;  %626 = vmatpush3.bf16.msra.mxu1 %v635_v8 }
  0x1c   :  { %594 = vmatprep.subr.bf16.mxu0 %v636_v9  ;;  %619 = vmatprep.subr.bf16.mxu1 %v636_v9 }
  0x1f   :  { %595 = vmatpush3.bf16.msra.mxu0 %v636_v9  ;;  %627 = vmatpush3.bf16.msra.mxu1 %v636_v9 }
  0x22   :  { %597 = vmatmul.mubr.bf16.vlgmr.msra.gmra.mrb[0].mxu0 %v638_v10  ;;  %605 = vmatmul.mubr.bf16.vlgmr.msra.gmra.mrb[0].mxu1 %v642_v11 }
  0x23   :  { %600 = vmatprep.mubr.bf16.mxu0 %v639_v12  ;;  %608 = vmatprep.mubr.bf16.mxu1 %v643_v13 }
  0x2a   :  { %601 = vmatmul.mubr.bf16.gmra.mrb[4].mxu0 %v640_v14  ;;  %609 = vmatmul.mubr.bf16.gmra.mrb[4].mxu1 %v644_v15 }
  0xf5   :  { %v598_v17 = vpop.f32.mrb[0].mxu0  ;;  %v606_v18 = vpop.f32.mrb[0].mxu1 }
  0xf6   :  { %v219_v19 = vpop.f32.mrb[1].mxu0  ;;  %v251_v20 = vpop.f32.mrb[1].mxu1  ;;  %v389_v32 = vmul.f32 %v598_v17, %v598_v17  ;;  %v397_v4 = vmul.f32 %v606_v18, %v606_v18 }
  0xf7   :  { %v599_v21 = vpop.f32.mrb[2].mxu0  ;;  %v607_v22 = vpop.f32.mrb[2].mxu1  ;;  %v387_v23 = vmul.f32 %v219_v19, %v219_v19  ;;  %v395_v62 = vmul.f32 %v251_v20, %v251_v20 }
  0xf8   :  { %v525_v24 = vpack.c.bf16 %v599_v21, %v598_v17  ;;  %v222_v25 = vpop.f32.mrb[3].mxu0  ;;  %v545_v26 = vpack.c.bf16 %v607_v22, %v606_v18  ;;  %v254_v27 = vpop.f32.mrb[3].mxu1  ;;  %v390_v35 = vmul.f32 %v599_v21, %v599_v21  ;;  %v398_v7 = vmul.f32 %v607_v22, %v607_v22 }
  0xf9   :  { %v520_v28 = vpack.c.bf16 %v222_v25, %v219_v19  ;;  %v363_v29 = vadd.f32 %v222_v25, %v219_v19  ;;  %v388_v30 = vmul.f32 %v222_v25, %v222_v25  ;;  %v540_v31 = vpack.c.bf16 %v254_v27, %v251_v20 }
  0xfa   :  { %557 = vst [vmem:[%s750_s2 + $0x8] sm:$0xff] %v525_v24   ;;  %561 = vst [vmem:[%s750_s2 + $0x28] sm:$0xff] %v545_v26   ;;  %v396_v3 = vmul.f32 %v254_v27, %v254_v27 }
  0xfb   :  { %521 = vst [vmem:[%s750_s2] sm:$0xff] %v520_v28   ;;  %v364_v33 = vadd.f32 %v598_v17, %v363_v29  ;;  %v403_v34 = vadd.f32 %v388_v30, %v387_v23  ;;  %560 = vst [vmem:[%s750_s2 + $0x20] sm:$0xff] %v540_v31  }
  0xfd   :  { %v404_v36 = vadd.f32 %v403_v34, %v389_v32  ;;  %v602_v37 = vpop.f32.mrb[4].mxu0  ;;  %v365_v38 = vadd.f32 %v599_v21, %v364_v33  ;;  %v610_v39 = vpop.f32.mrb[4].mxu1  ;;  %v362_v32 = vld [vmem:[#allocation2] sm:$0x1] }
  0xfe   :  { %v235_v40 = vpop.f32.mrb[5].mxu0  ;;  %v267_v41 = vpop.f32.mrb[5].mxu1  ;;  %v393_v56 = vmul.f32 %v602_v37, %v602_v37  ;;  %v401_v16 = vmul.f32 %v610_v39, %v610_v39 }
  0xff   :  { %v366_v42 = vadd.f32 %v365_v38, %v235_v40  ;;  %v391_v43 = vmul.f32 %v235_v40, %v235_v40  ;;  %v405_v44 = vadd.f32 %v404_v36, %v390_v35  ;;  %v603_v45 = vpop.f32.mrb[6].mxu0  ;;  %v611_v46 = vpop.f32.mrb[6].mxu1  ;;  %v399_v10 = vmul.f32 %v267_v41, %v267_v41  ;;  %v386_v35 = vld [vmem:[#allocation3] sm:$0x1] }
 0x100   :  { %v535_v47 = vpack.c.bf16 %v603_v45, %v602_v37  ;;  %v238_v48 = vpop.f32.mrb[7].mxu0  ;;  %v555_v49 = vpack.c.bf16 %v611_v46, %v610_v39  ;;  %v270_v50 = vpop.f32.mrb[7].mxu1  ;;  %v394_v59 = vmul.f32 %v603_v45, %v603_v45 }
 0x101   :  { %v406_v51 = vadd.f32 %v405_v44, %v391_v43  ;;  %v530_v52 = vpack.c.bf16 %v238_v48, %v235_v40  ;;  %v367_v53 = vadd.f32 %v366_v42, %v238_v48  ;;  %v392_v54 = vmul.f32 %v238_v48, %v238_v48 }
 0x102   :  { %559 = vst [vmem:[%s750_s2 + $0x18] sm:$0xff] %v535_v47   ;;  %563 = vst [vmem:[%s750_s2 + $0x38] sm:$0xff] %v555_v49   ;;  %v550_v55 = vpack.c.bf16 %v270_v50, %v267_v41  ;;  %v400_v15 = vmul.f32 %v270_v50, %v270_v50 }
 0x103   :  { %558 = vst [vmem:[%s750_s2 + $0x10] sm:$0xff] %v530_v52   ;;  %v368_v57 = vadd.f32 %v602_v37, %v367_v53  ;;  %v407_v58 = vadd.f32 %v406_v51, %v392_v54 }
 0x104   :  { %562 = vst [vmem:[%s750_s2 + $0x30] sm:$0xff] %v550_v55  }
 0x105   :  { %v408_v60 = vadd.f32 %v407_v58, %v393_v56  ;;  %v369_v61 = vadd.f32 %v603_v45, %v368_v57 }
 0x107   :  { %v370_v63 = vadd.f32 %v369_v61, %v251_v20  ;;  %v409_v0 = vadd.f32 %v408_v60, %v394_v59  ;;  %v402_v20 = vmul.f32 %v611_v46, %v611_v46 }
 0x109   :  { %v410_v1 = vadd.f32 %v409_v0, %v395_v62  ;;  %v371_v2 = vadd.f32 %v370_v63, %v254_v27 }
 0x10b   :  { %v372_v5 = vadd.f32 %v606_v18, %v371_v2  ;;  %v411_v6 = vadd.f32 %v410_v1, %v396_v3 }
 0x10d   :  { %v412_v8 = vadd.f32 %v411_v6, %v397_v4  ;;  %v373_v9 = vadd.f32 %v607_v22, %v372_v5 }
 0x10f   :  { %v374_v11 = vadd.f32 %v373_v9, %v267_v41  ;;  %v413_v12 = vadd.f32 %v412_v8, %v398_v7 }
 0x111   :  { %v414_v13 = vadd.f32 %v413_v12, %v399_v10  ;;  %v375_v14 = vadd.f32 %v374_v11, %v270_v50 }
 0x113   :  { %v376_v17 = vadd.f32 %v610_v39, %v375_v14  ;;  %v415_v19 = vadd.f32 %v414_v13, %v400_v15 }
 0x115   :  { %v377_v21 = vadd.f32 %v611_v46, %v376_v17  ;;  %v416_v23 = vadd.f32 %v415_v19, %v401_v16 }
 0x117   :  { %v378_v24 = vrot.slane %v377_v21, 4  ;;  %v417_v25 = vadd.f32 %v416_v23, %v402_v20 }
 0x119   :  { %v379_v26 = vadd.f32 %v378_v24, %v377_v21  ;;  %v418_v18 = vrot.slane %v417_v25, 4 }
 0x11b   :  { %v380_v27 = vrot.slane %v379_v26, 2  ;;  %v419_v28 = vadd.f32 %v418_v18, %v417_v25 }
 0x11d   :  { %v381_v29 = vadd.f32 %v380_v27, %v379_v26  ;;  %v420_v22 = vrot.slane %v419_v28, 2 }
 0x11f   :  { %v382_v30 = vrot.slane %v381_v29, 1  ;;  %v421_v31 = vadd.f32 %v420_v22, %v419_v28 }
 0x121   :  { %v383_v33 = vadd.f32 %v382_v30, %v381_v29  ;;  %v422_v34 = vrot.slane %v421_v31, 1 }
 0x123   :  { %v384_v36 = vadd.f32 %v383_v33, %v362_v32  ;;  %v423_v37 = vadd.f32 %v422_v34, %v421_v31 }
 0x125   :  { %385 = vst [vmem:[#allocation2] sm:$0x1] %v384_v36  ;;  %v424_v38 = vadd.f32 %v423_v37, %v386_v35 }
 0x127   :  { %425 = vst [vmem:[#allocation3] sm:$0x1] %v424_v38 }
 0x12c   :  { %v429_v39 = vld [vmem:[#allocation2] sm:$0x1] }
 0x12d   :  { %430 = vst [vmem:[%s749_s3] sm:$0x1] %v429_v39 }
 0x12e   :  { %v431_v40 = vld [vmem:[#allocation3] sm:$0x1] }
 0x12f   :  { %432 = vst [vmem:[%s749_s3 + $0x1] sm:$0x1] %v431_v40 }

// kernel: _lambda_.8
= control target key start
LH: loop header
LB: loop body
LE: loop exit
PB: predicated region body
PF: predicated region fallthrough
CT: control target
= control target key end

     0   :  { %s136_s0 = inlined_call_operand.vmem [shape: bf16[32,128], index: 0, kind: input, shape index: {}]   ;;  %s137_s1 = inlined_call_operand.vmem [shape: f32[2,128], index: 1, kind: input, shape index: {}]   ;;  %s138_s2 = inlined_call_operand.vmem [shape: bf16[32,128], index: 2, kind: output, shape index: {}]  }
   0x1   :  { %v73_v0 = vld [vmem:[%s137_s1] ss:$0 sm:$0xff]  ;;  %v101_v4 = vld [vmem:[%s136_s0 + $0x8] sm:$0xff]   ;;  %v74_v5 = vld [vmem:[%s137_s1 + $0x1] ss:$0 sm:$0xff] }
   0x2   :  { %v84_v1 = vld [vmem:[%s136_s0] sm:$0xff]   ;;  %v89_v6 = vunpack.c.l.bf16 %v101_v4  ;;  %v90_v7 = vunpack.c.h.bf16 %v101_v4 }
   0x3   :  { %v85_v2 = vunpack.c.l.bf16 %v84_v1  ;;  %v86_v3 = vunpack.c.h.bf16 %v84_v1 }
   0x4   :  { %v27_v10 = vmul.f32 %v89_v6, %v73_v0  ;;  %v28_v11 = vmul.f32 %v90_v7, %v73_v0 }
   0x5   :  { %v25_v8 = vmul.f32 %v85_v2, %v73_v0  ;;  %v26_v9 = vmul.f32 %v86_v3, %v73_v0 }
   0x6   :  { %v35_v14 = vadd.f32 %v74_v5, %v27_v10  ;;  %v36_v15 = vadd.f32 %v74_v5, %v28_v11 }
   0x7   :  { %v33_v12 = vadd.f32 %v74_v5, %v25_v8  ;;  %v34_v13 = vadd.f32 %v74_v5, %v26_v9 }
   0x8   :  { %vm39_vm2 = vcmp.ge.f32.partialorder %v35_v14, 0.0  ;;  %vm40_vm3 = vcmp.ge.f32.partialorder %v36_v15, 0.0  ;;  %v43_v18 = vmul.f32 0.2, %v35_v14  ;;  %v44_v19 = vmul.f32 0.2, %v36_v15 }
   0x9   :  { %vm37_vm0 = vcmp.ge.f32.partialorder %v33_v12, 0.0  ;;  %vm38_vm1 = vcmp.ge.f32.partialorder %v34_v13, 0.0  ;;  %v41_v16 = vmul.f32 0.2, %v33_v12  ;;  %v42_v17 = vmul.f32 0.2, %v34_v13 }
   0xa   :  { %v47_v23 = vsel %vm39_vm2, %v35_v14, %v43_v18  ;;  %v48_v24 = vsel %vm40_vm3, %v36_v15, %v44_v19 }
   0xb   :  { %v45_v20 = vsel %vm37_vm0, %v33_v12, %v41_v16  ;;  %v46_v21 = vsel %vm38_vm1, %v34_v13, %v42_v17  ;;  %v99_v25 = vpack.c.bf16 %v48_v24, %v47_v23 }
   0xc   :  { %v94_v22 = vpack.c.bf16 %v46_v21, %v45_v20 }
   0xd   :  { %102 = vst [vmem:[%s138_s2 + $0x8] sm:$0xff] %v99_v25  }
   0xe   :  { %95 = vst [vmem:[%s138_s2] sm:$0xff] %v94_v22  }

// kernel: _lambda_.7
= control target key start
LH: loop header
LB: loop body
LE: loop exit
PB: predicated region body
PF: predicated region fallthrough
CT: control target
= control target key end

     0   :  { %v347_v10 = vmov 0.0   ;;  %s413_s1 = inlined_call_operand.vmem [shape: bf16[128,128], index: 1, kind: input, shape index: {}]   ;;  %s414_s0 = inlined_call_operand.vmem [shape: bf16[32,128], index: 0, kind: input, shape index: {}]   ;;  %s415_s3 = inlined_call_operand.vmem [shape: f32[8,128], index: 3, kind: output, shape index: {1}]   ;;  %s416_s2 = inlined_call_operand.vmem [shape: bf16[32,128], index: 2, kind: output, shape index: {0}]  }
   0x1   :  { %v337_v0 = vld [vmem:[%s413_s1] sm:$0xff]   ;;  %v338_v1 = vld [vmem:[%s413_s1 + $0x8] sm:$0xff]   ;;  %v339_v2 = vld [vmem:[%s413_s1 + $0x10] sm:$0xff]   ;;  %54 = vst [vmem:[#allocation2] sm:$0x1] %v347_v10 }
   0x2   :  { %316 = vmatprep.subr.bf16.mxu0 %v337_v0  ;;  %v340_v3 = vld [vmem:[%s413_s1 + $0x18] sm:$0xff]   ;;  %v345_v4 = vld [vmem:[%s414_s0] sm:$0xff]   ;;  %v342_v6 = vld [vmem:[%s413_s1 + $0x28] sm:$0xff]   ;;  %55 = vst [vmem:[#allocation3] sm:$0x1] %v347_v10 }
   0x3   :  { %317 = vmatpush3.bf16.msra.mxu0 %v337_v0  ;;  %332 = vmatprep.mubr.bf16.mxu0 %v345_v4  ;;  %v341_v5 = vld [vmem:[%s413_s1 + $0x20] sm:$0xff]   ;;  %v343_v7 = vld [vmem:[%s413_s1 + $0x30] sm:$0xff]   ;;  %v344_v8 = vld [vmem:[%s413_s1 + $0x38] sm:$0xff]   ;;  %56 = vst [vmem:[%s415_s3] sm:$0xff] %v347_v10 }
   0x4   :  { %318 = vmatprep.subr.bf16.mxu0 %v338_v1  ;;  %v346_v9 = vld [vmem:[%s414_s0 + $0x8] sm:$0xff]  }
   0x7   :  { %319 = vmatpush3.bf16.msra.mxu0 %v338_v1 }
   0x8   :  { %320 = vmatprep.subr.bf16.mxu0 %v339_v2  ;;  %v206_v36 = vld [vmem:[#allocation2] sm:$0x1] }
   0x9   :  { %v218_v39 = vld [vmem:[#allocation3] sm:$0x1] }
   0xb   :  { %321 = vmatpush3.bf16.msra.mxu0 %v339_v2 }
   0xc   :  { %322 = vmatprep.subr.bf16.mxu0 %v340_v3 }
   0xf   :  { %323 = vmatpush3.bf16.msra.mxu0 %v340_v3 }
  0x10   :  { %324 = vmatprep.subr.bf16.mxu0 %v341_v5 }
  0x13   :  { %325 = vmatpush3.bf16.msra.mxu0 %v341_v5 }
  0x14   :  { %326 = vmatprep.subr.bf16.mxu0 %v342_v6 }
  0x17   :  { %327 = vmatpush3.bf16.msra.mxu0 %v342_v6 }
  0x18   :  { %328 = vmatprep.subr.bf16.mxu0 %v343_v7 }
  0x1b   :  { %329 = vmatpush3.bf16.msra.mxu0 %v343_v7 }
  0x1c   :  { %330 = vmatprep.subr.bf16.mxu0 %v344_v8 }
  0x1f   :  { %331 = vmatpush3.bf16.msra.mxu0 %v344_v8 }
  0x22   :  { %333 = vmatmul.mubr.bf16.vlgmr.msra.gmra.mrb[0].mxu0 %v346_v9 }
  0xf5   :  { %v334_v11 = vpop.f32.mrb[0].mxu0 }
  0xf6   :  { %v171_v12 = vpop.f32.mrb[1].mxu0  ;;  %v221_v20 = vmul.f32 %v334_v11, %v334_v11 }
  0xf7   :  { %v335_v13 = vpop.f32.mrb[2].mxu0  ;;  %v219_v16 = vmul.f32 %v171_v12, %v171_v12 }
  0xf8   :  { %v303_v14 = vpack.c.bf16 %v335_v13, %v334_v11  ;;  %v174_v15 = vpop.f32.mrb[3].mxu0  ;;  %v222_v23 = vmul.f32 %v335_v13, %v335_v13 }
  0xf9   :  { %v298_v17 = vpack.c.bf16 %v174_v15, %v171_v12  ;;  %v207_v18 = vadd.f32 %v174_v15, %v171_v12  ;;  %v220_v19 = vmul.f32 %v174_v15, %v174_v15 }
  0xfa   :  { %305 = vst [vmem:[%s416_s2 + $0x8] sm:$0xff] %v303_v14  }
  0xfb   :  { %299 = vst [vmem:[%s416_s2] sm:$0xff] %v298_v17   ;;  %v208_v21 = vadd.f32 %v334_v11, %v207_v18  ;;  %v223_v22 = vadd.f32 %v220_v19, %v219_v16 }
  0xfd   :  { %v209_v24 = vadd.f32 %v335_v13, %v208_v21  ;;  %v224_v25 = vadd.f32 %v223_v22, %v221_v20 }
  0xff   :  { %v210_v26 = vrot.slane %v209_v24, 4  ;;  %v225_v27 = vadd.f32 %v224_v25, %v222_v23 }
 0x101   :  { %v211_v28 = vadd.f32 %v210_v26, %v209_v24  ;;  %v226_v29 = vrot.slane %v225_v27, 4 }
 0x103   :  { %v212_v30 = vrot.slane %v211_v28, 2  ;;  %v227_v31 = vadd.f32 %v226_v29, %v225_v27 }
 0x105   :  { %v213_v32 = vadd.f32 %v212_v30, %v211_v28  ;;  %v228_v33 = vrot.slane %v227_v31, 2 }
 0x107   :  { %v214_v34 = vrot.slane %v213_v32, 1  ;;  %v229_v35 = vadd.f32 %v228_v33, %v227_v31 }
 0x109   :  { %v215_v37 = vadd.f32 %v214_v34, %v213_v32  ;;  %v230_v38 = vrot.slane %v229_v35, 1 }
 0x10b   :  { %v216_v40 = vadd.f32 %v215_v37, %v206_v36  ;;  %v231_v41 = vadd.f32 %v230_v38, %v229_v35 }
 0x10d   :  { %217 = vst [vmem:[#allocation2] sm:$0x1] %v216_v40  ;;  %v232_v42 = vadd.f32 %v231_v41, %v218_v39 }
 0x10f   :  { %233 = vst [vmem:[#allocation3] sm:$0x1] %v232_v42 }
 0x114   :  { %v237_v43 = vld [vmem:[#allocation2] sm:$0x1] }
 0x115   :  { %238 = vst [vmem:[%s415_s3] sm:$0x1] %v237_v43 }
 0x116   :  { %v239_v44 = vld [vmem:[#allocation3] sm:$0x1] }
 0x117   :  { %240 = vst [vmem:[%s415_s3 + $0x1] sm:$0x1] %v239_v44 }

// kernel: _lambda_.9
= control target key start
LH: loop header
LB: loop body
LE: loop exit
PB: predicated region body
PF: predicated region fallthrough
CT: control target
= control target key end

     0   :  { %s355_s1 = inlined_call_operand.vmem [shape: bf16[256,128], index: 1, kind: input, shape index: {}]   ;;  %s356_s0 = inlined_call_operand.vmem [shape: bf16[16,256], index: 0, kind: input, shape index: {}]   ;;  %s357_s2 = inlined_call_operand.vmem [shape: f32[16,128], index: 2, kind: output, shape index: {}]  }
   0x1   :  { %v253_v0 = vld [vmem:[%s355_s1 + $0x40] sm:$0xff]   ;;  %v255_v2 = vld [vmem:[%s355_s1 + $0x48] sm:$0xff]   ;;  %v257_v4 = vld [vmem:[%s355_s1 + $0x50] sm:$0xff]  }
   0x2   :  { %v254_v1 = vld [vmem:[%s355_s1] sm:$0xff]   ;;  %231 = vmatprep.subr.bf16.mxu0 %v253_v0  ;;  %v256_v3 = vld [vmem:[%s355_s1 + $0x8] sm:$0xff]   ;;  %v258_v5 = vld [vmem:[%s355_s1 + $0x10] sm:$0xff]  }
   0x3   :  { %232 = vmatpush3.bf16.msra.mxu0 %v254_v1  ;;  %v259_v6 = vld [vmem:[%s355_s1 + $0x58] sm:$0xff]   ;;  %v261_v8 = vld [vmem:[%s355_s1 + $0x60] sm:$0xff]   ;;  %v263_v10 = vld [vmem:[%s355_s1 + $0x68] sm:$0xff]  }
   0x4   :  { %233 = vmatprep.subr.bf16.mxu0 %v255_v2  ;;  %v260_v7 = vld [vmem:[%s355_s1 + $0x18] sm:$0xff]   ;;  %v262_v9 = vld [vmem:[%s355_s1 + $0x20] sm:$0xff]   ;;  %v264_v12 = vld [vmem:[%s355_s1 + $0x28] sm:$0xff]  }
   0x5   :  { %v271_v11 = vld [vmem:[%s356_s0 + $0x4] ss:$8 sps:$4 sm:$0xff]   ;;  %v265_v13 = vld [vmem:[%s355_s1 + $0x70] sm:$0xff]   ;;  %v267_v15 = vld [vmem:[%s355_s1 + $0x78] sm:$0xff]  }
   0x6   :  { %184 = vmatprep.mubr.bf16.mxu0 %v271_v11  ;;  %v266_v14 = vld [vmem:[%s355_s1 + $0x30] sm:$0xff]   ;;  %v268_v16 = vld [vmem:[%s355_s1 + $0x38] sm:$0xff]   ;;  %v269_v17 = vld [vmem:[%s356_s0] ss:$8 sps:$4 sm:$0xff]  }
   0x7   :  { %234 = vmatpush3.bf16.msra.mxu0 %v256_v3 }
   0x8   :  { %235 = vmatprep.subr.bf16.mxu0 %v257_v4 }
   0xb   :  { %236 = vmatpush3.bf16.msra.mxu0 %v258_v5 }
   0xc   :  { %237 = vmatprep.subr.bf16.mxu0 %v259_v6 }
   0xf   :  { %238 = vmatpush3.bf16.msra.mxu0 %v260_v7 }
  0x10   :  { %239 = vmatprep.subr.bf16.mxu0 %v261_v8 }
  0x13   :  { %240 = vmatpush3.bf16.msra.mxu0 %v262_v9 }
  0x14   :  { %241 = vmatprep.subr.bf16.mxu0 %v263_v10 }
  0x17   :  { %242 = vmatpush3.bf16.msra.mxu0 %v264_v12 }
  0x18   :  { %243 = vmatprep.subr.bf16.mxu0 %v265_v13 }
  0x1b   :  { %244 = vmatpush3.bf16.msra.mxu0 %v266_v14 }
  0x1c   :  { %245 = vmatprep.subr.bf16.mxu0 %v267_v15 }
  0x1f   :  { %246 = vmatpush3.bf16.msra.mxu0 %v268_v16 }
  0x22   :  { %185 = vmatmul.mubr.bf16.vlgmr.msra.gmra.mrb[0].mxu0 %v269_v17 }
  0xf5   :  { %v247_v18 = vpop.f32.mrb[0].mxu0 }
  0xf6   :  { %v248_v19 = vpop.f32.mrb[1].mxu0 }
  0xf7   :  { %v249_v20 = vadd.f32 %v248_v19, %v247_v18  ;;  %v250_v21 = vpop.f32.mrb[2].mxu0 }
  0xf8   :  { %v251_v22 = vpop.f32.mrb[3].mxu0 }
  0xf9   :  { %v229_v23 = vmul.f32 -1.442695, %v249_v20  ;;  %v252_v24 = vadd.f32 %v251_v22, %v250_v21 }
  0xfb   :  { %272 = vpow2.f32 %v229_v23  ;;  %v230_v25 = vmul.f32 -1.442695, %v252_v24 }
  0xfd   :  { %274 = vpow2.f32 %v230_v25 }
 0x105   :  { %v273_v26 = vpop.eup %272 }
 0x106   :  { %v199_v27 = vadd.f32 1.0, %v273_v26 }
 0x107   :  { %v275_v28 = vpop.eup %274 }
 0x108   :  { %276 = vrcp.f32 %v199_v27  ;;  %v200_v29 = vadd.f32 1.0, %v275_v28 }
 0x10a   :  { %278 = vrcp.f32 %v200_v29 }
 0x112   :  { %v277_v30 = vpop.eup %276 }
 0x113   :  { %205 = vst [vmem:[%s357_s2] sm:$0xff] %v277_v30 }
 0x114   :  { %v279_v31 = vpop.eup %278 }
 0x115   :  { %206 = vst [vmem:[%s357_s2 + $0x8] sm:$0xff] %v279_v31 }

</bundles_post_ra>
